<compile_context>
chip_gen: v7x
topology: tpu7x:2x2x1
jax: 0.10.0
libtpu: 0.0.40
codegen_flags: <defaults>
</compile_context>

<pallas_src>
import jax
import jax.numpy as jnp
from jax import lax
from jax.experimental import pallas as pl
from jax.experimental.pallas import tpu as pltpu


def _round_up(x, m):
    return (x + m - 1) // m * m


def _actor_kernel(x_ref, w_ref, b_ref, o_ref):
    # x: (TB, S)  obs tile   (batch on sublanes, features on lanes)
    # w: (A, S)   PyTorch-layout weight, VMEM-resident across grid steps
    # b: (A, 1)   bias column (f32), VMEM-resident
    # o: (A, TB)  transposed output tile -> batch on lanes (lane-dense stores)
    x = x_ref[...]
    w = w_ref[...]
    # Contract w's feature dim (1) against x's feature dim (1) on the MXU:
    # (A, S) x (TB, S) -> (A, TB). No transpose of the PyTorch weight needed.
    y = lax.dot_general(
        w, x,
        dimension_numbers=(((1,), (1,)), ((), ())),
        preferred_element_type=jnp.float32,
    )
    y = y + b_ref[...]                       # (A, 1) broadcast along lanes, f32
    o_ref[...] = jnp.tanh(y).astype(o_ref.dtype)


def ddpg_actor_forward(obs, w_action, b_action, *, block_batch=2048,
                       compute_dtype=jnp.float32):
    """action = tanh(obs @ w_action.T + b_action), computed in a Pallas kernel.

    obs:      (B, state_dim)
    w_action: (action_dim, state_dim)  -- PyTorch nn.Linear layout (NOT pre-transposed)
    b_action: (action_dim,)
    returns:  (B, action_dim) float32
    """
    B, S = obs.shape
    A = w_action.shape[0]

    # Batch tile: large enough to amortize per-step overhead and saturate the DMA,
    # multiple of 128 so batch maps densely onto output lanes. Stays tiny in VMEM
    # (TB*S*itemsize per buffer), so it is safe on v7x's smaller VMEM too.
    tb = min(int(block_batch), _round_up(max(B, 1), 128))
    b_pad = _round_up(B, tb)

    x = obs.astype(compute_dtype)
    if b_pad != B:
        x = jnp.pad(x, ((0, b_pad - B), (0, 0)))
    w = w_action.astype(compute_dtype)
    b2 = b_action.reshape(A, 1).astype(jnp.float32)

    itemsize = jnp.dtype(compute_dtype).itemsize
    cost = pl.CostEstimate(
        flops=2 * B * S * A,
        transcendentals=B * A,
        bytes_accessed=B * S * itemsize + A * S * itemsize + A * B * 4,
    )

    out_t = pl.pallas_call(
        _actor_kernel,
        out_shape=jax.ShapeDtypeStruct((A, b_pad), jnp.float32),
        grid=(b_pad // tb,),
        in_specs=[
            pl.BlockSpec((tb, S), lambda i: (i, 0)),   # obs: streamed over batch
            pl.BlockSpec((A, S), lambda i: (0, 0)),    # weight: VMEM-resident
            pl.BlockSpec((A, 1), lambda i: (0, 0)),    # bias:   VMEM-resident
        ],
        out_specs=pl.BlockSpec((A, tb), lambda i: (0, i)),  # lane-dense output
        compiler_params=pltpu.CompilerParams(
            dimension_semantics=("parallel",),
        ),
        cost_estimate=cost,
    )(x, w, b2)

    # (A, B_pad) -> (B, A): strip batch padding, tiny transpose epilogue.
    return out_t[:, :B].T


def init_params(key, state_dim, action_dim, w_scale=0.001):
    """Matches layer_init(nn.Linear(state_dim, action_dim), 0.001):
    kaiming_normal_ (fan_in=state_dim, gain=sqrt(2)) scaled by w_scale, bias = 0."""
    std = (2.0 / state_dim) ** 0.5
    w = jax.random.normal(key, (action_dim, state_dim), jnp.float32) * std * w_scale
    b = jnp.zeros((action_dim,), jnp.float32)
    return w, b


if __name__ == "__main__":
    batch = 8
    state_dim = 32
    action_dim = 8

    key = jax.random.PRNGKey(0)
    k_obs, k_w = jax.random.split(key)

    obs = jax.random.normal(k_obs, (batch, state_dim), jnp.float32)
    w_action, b_action = init_params(k_w, state_dim, action_dim)

    ref = jnp.tanh(obs @ w_action.T + b_action)

    # Exact (f32) path — matches the PyTorch forward semantics.
    action = ddpg_actor_forward(obs, w_action, b_action)
    action = jax.block_until_ready(action)
    assert action.shape == (batch, action_dim)
    assert jnp.allclose(action, ref, atol=1e-5, rtol=1e-5)

    # bf16 obs/weight stream (halves HBM traffic, f32 accumulate + epilogue).
    action_bf16 = ddpg_actor_forward(obs, w_action, b_action,
                                     compute_dtype=jnp.bfloat16)
    action_bf16 = jax.block_until_ready(action_bf16)
    assert action_bf16.shape == (batch, action_dim)
    assert jnp.allclose(action_bf16, ref, atol=1e-3, rtol=5e-2)

    print("KERNEL_OK")
</pallas_src>

<mosaic_0001>
module attributes {stable_mosaic.version = 11 : i64} {
  func.func @_actor_kernel(%arg0: i32, %arg1: memref<128x32xf32, #tpu.memory_space<vmem>>, %arg2: memref<8x32xf32, #tpu.memory_space<vmem>>, %arg3: memref<8x1xf32, #tpu.memory_space<vmem>>, %arg4: memref<8x128xf32, #tpu.memory_space<vmem>>) attributes {dimension_semantics = [#tpu.dimension_semantics<parallel>], iteration_bounds = array<i64: 1>, scalar_prefetch = 0 : i64, scratch_operands = 0 : i64, tpu.core_type = #tpu.core_type<tc>, window_params = [{transform_indices = @transform_0, window_bounds = array<i64: 128, 32>}, {pipeline_mode = #tpu.pipeline_mode<synchronous>, transform_indices = @transform_1, window_bounds = array<i64: 8, 32>}, {pipeline_mode = #tpu.pipeline_mode<synchronous>, transform_indices = @transform_2, window_bounds = array<i64: 8, 1>}, {transform_indices = @transform_3, window_bounds = array<i64: 8, 128>}]} {
    %c0 = arith.constant 0 : index
    %c0_0 = arith.constant 0 : index
    %0 = vector.load %arg1[%c0, %c0_0] : memref<128x32xf32, #tpu.memory_space<vmem>>, vector<128x32xf32>
    %c0_1 = arith.constant 0 : index
    %c0_2 = arith.constant 0 : index
    %1 = vector.load %arg2[%c0_1, %c0_2] : memref<8x32xf32, #tpu.memory_space<vmem>>, vector<8x32xf32>
    %cst = arith.constant dense<0.000000e+00> : vector<8x128xf32>
    %2 = tpu.matmul %1, %0, %cst {dimension_numbers = #tpu.dot_dimension_numbers<[1], [1], [0], [0], [0, 0, 1, 0], [], []>} : vector<8x32xf32>, vector<128x32xf32>, vector<8x128xf32> -> vector<8x128xf32>
    %c0_3 = arith.constant 0 : index
    %c0_4 = arith.constant 0 : index
    %3 = vector.load %arg3[%c0_3, %c0_4] : memref<8x1xf32, #tpu.memory_space<vmem>>, vector<8x1xf32>
    %4 = vector.broadcast %3 : vector<8x1xf32> to vector<8x128xf32>
    %5 = arith.addf %2, %4 : vector<8x128xf32>
    %6 = math.tanh %5 : vector<8x128xf32>
    %c0_5 = arith.constant 0 : index
    %c0_6 = arith.constant 0 : index
    %7 = vector.load %arg4[%c0_5, %c0_6] : memref<8x128xf32, #tpu.memory_space<vmem>>, vector<8x128xf32>
    tpu.vector_store %arg4[%c0_5, %c0_6], %6 {strides = array<i32>} : memref<8x128xf32, #tpu.memory_space<vmem>>, vector<8x128xf32>,
    return
  }
  func.func @transform_0(%arg0: i32) -> (i32, i32) {
    %c0_i32 = arith.constant 0 : i32
    %c0_i32_0 = arith.constant 0 : i32
    return %arg0, %c0_i32 : i32, i32
  }
  func.func @transform_1(%arg0: i32) -> (i32, i32) {
    %c0_i32 = arith.constant 0 : i32
    %c0_i32_0 = arith.constant 0 : i32
    %c0_i32_1 = arith.constant 0 : i32
    return %c0_i32, %c0_i32_0 : i32, i32
  }
  func.func @transform_2(%arg0: i32) -> (i32, i32) {
    %c0_i32 = arith.constant 0 : i32
    %c0_i32_0 = arith.constant 0 : i32
    %c0_i32_1 = arith.constant 0 : i32
    return %c0_i32, %c0_i32_0 : i32, i32
  }
  func.func @transform_3(%arg0: i32) -> (i32, i32) {
    %c0_i32 = arith.constant 0 : i32
    %c0_i32_0 = arith.constant 0 : i32
    return %c0_i32, %arg0 : i32, i32
  }
}

</mosaic_0001>

<bundles_post_ra>
// kernel: tpu_custom_call.1
= control target key start
LH: loop header
LB: loop body
LE: loop exit
PB: predicated region body
PF: predicated region fallthrough
CT: control target
= control target key end

     0   :  { %vm38_vm0 = vcmask 261120   ;;  %v309_v2 = vmov 0.0|0.0   ;;  %vm310_vm2 = vmmov 0   ;;  %v311_v5 = vmov 0.0   ;;  %s423_s0 = inlined_call_operand.vmem [shape: f32[128,32], index: 0, kind: input, shape index: {}]   ;;  %s424_s1 = inlined_call_operand.vmem [shape: f32[8,32], index: 1, kind: input, shape index: {}]   ;;  %s425_s2 = inlined_call_operand.vmem [shape: f32[8,1], index: 2, kind: input, shape index: {}]   ;;  %s426_s3 = inlined_call_operand.hbm [shape: f32[8,128], index: 3, kind: output, shape index: {}]  }
   0x1   :  { %v15_v0 = vld [vmem:[%s423_s0] sm:$0xff]  ;;  %v16_v1 = vld [vmem:[%s423_s0 + $0x8] sm:$0xff]  ;;  %245 = vmatprep.subr.bf16.mxu0 %v309_v2  ;;  %vm342_vm1 = vmpackc.low %vm38_vm0, %vm38_vm0  ;;  %242 = vmatprep.mubr.msk.f32.mxu0 %vm310_vm2, %v311_v5  ;;  %v312_v6 = vmov 0  }
   0x2   :  { %v246_v3 = vpack.c.bf16 %v16_v1, %v15_v0  ;;  %282 = vset.pattern.permute.xlu0 %v312_v6  ;;  %v17_v7 = vld [vmem:[%s423_s0 + $0x10] sm:$0xff]  ;;  %v18_v8 = vld [vmem:[%s423_s0 + $0x18] sm:$0xff]  ;;  %v32_v9 = vld [vmem:[%s425_s2] sm:$0xff] }
   0x4   :  { %248 = vmatpush3.bf16.xpose.msk.msra.mxu0 %vm342_vm1, %v246_v3 }
   0x5   :  { %249 = vmatprep.subr.bf16.mxu0 %v309_v2 }
   0x6   :  { %8 = vsyncpa [#allocation3], 0  ;;  %v250_v10 = vpack.c.bf16 %v18_v8, %v17_v7  ;;  %35 = vperm.xlu0 %282, %v32_v9   ;;  %v19_v11 = vld [vmem:[%s423_s0 + $0x20] sm:$0xff]  ;;  %v20_v12 = vld [vmem:[%s423_s0 + $0x28] sm:$0xff]  ;;  %s313_s20 = smov [#allocation2]  }
   0x7   :  { %v254_v13 = vpack.c.bf16 %v20_v12, %v19_v11  ;;  %v21_v14 = vld [vmem:[%s423_s0 + $0x30] sm:$0xff]  ;;  %v22_v15 = vld [vmem:[%s423_s0 + $0x38] sm:$0xff]  ;;  %v23_v17 = vld [vmem:[%s423_s0 + $0x40] sm:$0xff]  ;;  %s168_s21 = sshll.u32 %s313_s20, 4  ;;  %s169_s21 = int_to_ptr.vmem [resolvable:$true] %s168_s21 }
   0x8   :  { %v258_v16 = vpack.c.bf16 %v22_v15, %v21_v14  ;;  %v24_v18 = vld [vmem:[%s423_s0 + $0x48] sm:$0xff]  ;;  %v25_v20 = vld [vmem:[%s423_s0 + $0x50] sm:$0xff]  ;;  %v26_v21 = vld [vmem:[%s423_s0 + $0x58] sm:$0xff]  ;;  %p290_p1 = scmp.lt.s32.totalorder %s169_s21, %s169_s21 }
   0x9   :  { %v262_v19 = vpack.c.bf16 %v24_v18, %v23_v17  ;;  %v266_v22 = vpack.c.bf16 %v26_v21, %v25_v20  ;;  %v27_v23 = vld [vmem:[%s423_s0 + $0x60] sm:$0xff]  ;;  %v28_v24 = vld [vmem:[%s423_s0 + $0x68] sm:$0xff]  ;;  %v29_v26 = vld [vmem:[%s423_s0 + $0x70] sm:$0xff] }
   0xa   :  { %v270_v25 = vpack.c.bf16 %v28_v24, %v27_v23  ;;  %v30_v27 = vld [vmem:[%s423_s0 + $0x78] sm:$0xff]  ;;  %v31_v29 = vld [vmem:[%s424_s1] sm:$0xff]  ;;  %s285_s0 = scalar_lea.vmem %s169_s21, 128 }
   0xb   :  { %v274_v28 = vpack.c.bf16 %v30_v27, %v29_v26  ;;  %p286_p0 = scmp.ne.s32.totalorder %s169_s21, %s285_s0  ;;  %p291_p2 = scmp.lt.s32.totalorder %s285_s0, %s285_s0 }
   0xc   :  { %252 = vmatpush3.bf16.xpose.msk.msra.mxu0 %vm342_vm1, %v250_v10 }
   0xd   :  { %253 = vmatprep.subr.bf16.mxu0 %v309_v2  ;;  %p292_p3 = por %p291_p2, %p290_p1 }
   0xf   :  { %p293_p4 = pnand %p292_p3, %p286_p0 }
  0x14   :  { %256 = vmatpush3.bf16.xpose.msk.msra.mxu0 %vm342_vm1, %v254_v13 }
  0x15   :  { %257 = vmatprep.subr.bf16.mxu0 %v309_v2 }
  0x1c   :  { %260 = vmatpush3.bf16.xpose.msk.msra.mxu0 %vm342_vm1, %v258_v16 }
  0x1d   :  { %261 = vmatprep.subr.bf16.mxu0 %v309_v2 }
  0x24   :  { %264 = vmatpush3.bf16.xpose.msk.msra.mxu0 %vm342_vm1, %v262_v19 }
  0x25   :  { %265 = vmatprep.subr.bf16.mxu0 %v309_v2 }
  0x2c   :  { %268 = vmatpush3.bf16.xpose.msk.msra.mxu0 %vm342_vm1, %v266_v22 }
  0x2d   :  { %269 = vmatprep.subr.bf16.mxu0 %v309_v2 }
  0x34   :  { %272 = vmatpush3.bf16.xpose.msk.msra.mxu0 %vm342_vm1, %v270_v25 }
  0x35   :  { %273 = vmatprep.subr.bf16.mxu0 %v309_v2 }
  0x3c   :  { %276 = vmatpush3.bf16.xpose.msk.msra.mxu0 %vm342_vm1, %v274_v28 }
  0x43   :  { %243 = vmatmul.mubr.msk.f32.vlgmr.msra.gmra.mrb[0].mxu0 %vm38_vm0, %v31_v29 }
  0x85   :  { %v36_v30 = vpop.permute.xlu0 %35 }
 0x116   :  { %v156_v31 = vpop.f32.mrb[0].mxu0 }
 0x117   :  { %v157_v32 = vadd.f32 %v156_v31, %v36_v30  ;;  %v244_v33 = vpop.f32.mrb[1].mxu0 }
 0x119   :  { %283 = vtanh.f32 %v157_v32 }
 0x123   :  { %v284_v34 = vpop.eup %283 }
 0x124   :  { %161 = vst [vmem:[#allocation2] sm:$0xff] %v284_v34 }
 0x125   :  { %296 = shalt.err (!%p293_p4)
}
 0x126   :  { %s297_s23 = scalar_lea.hbm %s426_s3, 128 }
 0x127   :  { %p298_p5 = scmp.ne.s32.totalorder %s426_s3, %s297_s23  ;;  %p301_p6 = scmp.lt.u32.totalorder %s297_s23, %s426_s3 }
 0x129   :  { %p303_p7 = pnand %p301_p6, %p298_p5 }
 0x12b   :  { %306 = shalt.err (!%p303_p7)
}
 0x12c   :  { %171 = dma.vmem_to_hbm [thread:$0]  %s169_s21, 128, %s426_s3, [#allocation3]  }
 0x12d   :  { %307 = dma.done.wait [#allocation3], 128  }
 0x12e   :  { %308 = vsyncadd [#allocation3], 4294967168 }
 0x12f   :  { %175 = vsyncpa [#allocation3], 1 }

</bundles_post_ra>
